<compile_context>
chip_gen: v7x
topology: tpu7x:2x2x1
jax: 0.10.0
libtpu: 0.0.40
codegen_flags: <defaults>
</compile_context>

<pallas_src>
import functools

import jax
import jax.numpy as jnp
from jax.experimental import pallas as pl
from jax.experimental.pallas import tpu as pltpu


def _merge_shards_kernel(*refs, row_offsets, row_counts):
    """Concatenate W HBM shards [N_w, D] into one HBM output [sum(N_w), D].

    refs = (in_ref_0, ..., in_ref_{W-1}, out_hbm_ref, dma_sems)
    All refs are raw HBM refs (memory_space=pl.ANY).  The merge is W
    concurrent, contiguous HBM->HBM DMAs; offsets/counts tile the output, so
    every output row is written exactly once.
    """
    num_shards = len(row_counts)
    in_refs = refs[:num_shards]
    out_ref = refs[num_shards]
    sems = refs[num_shards + 1]

    # Static unroll over ranks (world size is small and known at trace time):
    # issue every shard copy first so all DMAs overlap, then wait for all.
    copies = []
    for w in range(num_shards):
        cp = pltpu.make_async_copy(
            in_refs[w],
            out_ref.at[pl.ds(row_offsets[w], row_counts[w])],
            sems.at[w],
        )
        cp.start()
        copies.append(cp)
    for cp in copies:
        cp.wait()


def infer_rw_tensor_pool_output_dist(lookups, world_size=None):
    """JAX/Pallas equivalent of InferRwTensorPoolOutputDist.forward.

    Args:
      lookups: list of [N_w, D] arrays (one per "rank"), equal D and dtype.
      world_size: optional; must equal len(lookups) if given (mirrors the
        torch._assert in the reference module).

    Returns:
      [sum_w N_w, D] array: the shards concatenated along dim 0 on the local
      device (merge_pooled_embeddings with cat_dim=0).
    """
    if world_size is not None and len(lookups) != world_size:
        raise ValueError("lookups size not world size")
    if not lookups:
        raise ValueError("need at least one lookup shard")

    dtype = lookups[0].dtype
    feat_dim = lookups[0].shape[1]
    for lk in lookups:
        if lk.ndim != 2 or lk.shape[1] != feat_dim or lk.dtype != dtype:
            raise ValueError("all lookup shards must be [N_w, D] with equal D and dtype")

    # Perf: trivial path -- a single shard needs no copy at all.
    if len(lookups) == 1:
        return lookups[0]

    counts = tuple(int(lk.shape[0]) for lk in lookups)
    offsets = []
    acc = 0
    for c in counts:
        offsets.append(acc)
        acc += c
    total_rows = acc
    num_shards = len(lookups)

    kernel = functools.partial(
        _merge_shards_kernel, row_offsets=tuple(offsets), row_counts=counts)

    # TODO(synk): multi-chip collection (shards resident on other devices)
    # would replace the local copies with pltpu.make_async_remote_copy +
    # pltpu.get_barrier_semaphore / CompilerParams(collective_id=...);
    # single-device semantics are implemented here.
    return pl.pallas_call(
        kernel,
        out_shape=jax.ShapeDtypeStruct((total_rows, feat_dim), dtype),
        grid_spec=pltpu.PrefetchScalarGridSpec(
            num_scalar_prefetch=0,
            grid=(1,),
            in_specs=[pl.BlockSpec(memory_space=pl.ANY)] * num_shards,
            out_specs=pl.BlockSpec(memory_space=pl.ANY),
            scratch_shapes=[pltpu.SemaphoreType.DMA((num_shards,))],
        ),
        compiler_params=pltpu.CompilerParams(
            dimension_semantics=("arbitrary",)),
    )(*lookups)


if __name__ == "__main__":
    key = jax.random.PRNGKey(0)
    k0, k1 = jax.random.split(key)

    # Small deterministic example: world_size=2 row-wise shards with different
    # row counts (multiples of 8 keep the DMAs f32-sublane-tile aligned) and a
    # lane-aligned feature dim (multiple of 128).
    D = 128
    lookups = [
        jax.random.normal(k0, (16, D), dtype=jnp.float32),  # "rank 0" shard
        jax.random.normal(k1, (24, D), dtype=jnp.float32),  # "rank 1" shard
    ]

    out = infer_rw_tensor_pool_output_dist(lookups, world_size=len(lookups))
    out = jax.block_until_ready(out)

    # Reference: merge_pooled_embeddings(..., cat_dim=0) == concat along dim 0.
    ref = jnp.concatenate(lookups, axis=0)
    assert out.shape == ref.shape and out.dtype == ref.dtype
    assert jnp.array_equal(out, ref), "mismatch vs reference concatenation"

    print("KERNEL_OK")
</pallas_src>

<mosaic_0001>
module attributes {stable_mosaic.version = 11 : i64} {
  func.func @_merge_shards_kernel(%arg0: i32, %arg1: memref<16x128xf32, #tpu.memory_space<any>>, %arg2: memref<24x128xf32, #tpu.memory_space<any>>, %arg3: memref<40x128xf32, #tpu.memory_space<any>>, %arg4: memref<2x!tpu.dma_semaphore, #tpu.memory_space<semaphore_mem>>) attributes {dimension_semantics = [#tpu.dimension_semantics<arbitrary>], iteration_bounds = array<i64: 1>, scalar_prefetch = 0 : i64, scratch_operands = 1 : i64, tpu.core_type = #tpu.core_type<tc>, window_params = [{}, {}, {}]} {
    %c0_i32 = arith.constant 0 : i32
    %c0_i32_0 = arith.constant 0 : i32
    %c0_i32_1 = arith.constant 0 : i32
    %0 = tpu.memref_slice %arg3[%c0_i32_0, %c0_i32_1] : memref<40x128xf32, #tpu.memory_space<any>> -> memref<16x128xf32, #tpu.memory_space<any>>
    %1 = tpu.memref_slice %arg4[%c0_i32] : memref<2x!tpu.dma_semaphore, #tpu.memory_space<semaphore_mem>> -> memref<1x!tpu.dma_semaphore, #tpu.memory_space<semaphore_mem>>
    %2 = tpu.memref_squeeze %1 : memref<1x!tpu.dma_semaphore, #tpu.memory_space<semaphore_mem>> -> memref<!tpu.dma_semaphore, #tpu.memory_space<semaphore_mem>>
    tpu.enqueue_dma source(%arg1 : memref<16x128xf32, #tpu.memory_space<any>>) target(%0 : memref<16x128xf32, #tpu.memory_space<any>>) target_semaphore(%2 : memref<!tpu.dma_semaphore, #tpu.memory_space<semaphore_mem>>)
    %c1_i32 = arith.constant 1 : i32
    %c16_i32 = arith.constant 16 : i32
    %c0_i32_2 = arith.constant 0 : i32
    %3 = tpu.memref_slice %arg3[%c16_i32, %c0_i32_2] : memref<40x128xf32, #tpu.memory_space<any>> -> memref<24x128xf32, #tpu.memory_space<any>>
    %4 = tpu.memref_slice %arg4[%c1_i32] : memref<2x!tpu.dma_semaphore, #tpu.memory_space<semaphore_mem>> -> memref<1x!tpu.dma_semaphore, #tpu.memory_space<semaphore_mem>>
    %5 = tpu.memref_squeeze %4 : memref<1x!tpu.dma_semaphore, #tpu.memory_space<semaphore_mem>> -> memref<!tpu.dma_semaphore, #tpu.memory_space<semaphore_mem>>
    tpu.enqueue_dma source(%arg2 : memref<24x128xf32, #tpu.memory_space<any>>) target(%3 : memref<24x128xf32, #tpu.memory_space<any>>) target_semaphore(%5 : memref<!tpu.dma_semaphore, #tpu.memory_space<semaphore_mem>>)
    %c0_i32_3 = arith.constant 0 : i32
    %c0_i32_4 = arith.constant 0 : i32
    %c0_i32_5 = arith.constant 0 : i32
    %6 = tpu.memref_slice %arg3[%c0_i32_4, %c0_i32_5] : memref<40x128xf32, #tpu.memory_space<any>> -> memref<16x128xf32, #tpu.memory_space<any>>
    %7 = tpu.memref_slice %arg4[%c0_i32_3] : memref<2x!tpu.dma_semaphore, #tpu.memory_space<semaphore_mem>> -> memref<1x!tpu.dma_semaphore, #tpu.memory_space<semaphore_mem>>
    %8 = tpu.memref_squeeze %7 : memref<1x!tpu.dma_semaphore, #tpu.memory_space<semaphore_mem>> -> memref<!tpu.dma_semaphore, #tpu.memory_space<semaphore_mem>>
    tpu.wait_dma2 semaphore(%8 : memref<!tpu.dma_semaphore, #tpu.memory_space<semaphore_mem>>) src(%arg1 : memref<16x128xf32, #tpu.memory_space<any>>) dst(%6 : memref<16x128xf32, #tpu.memory_space<any>>)
    %c1_i32_6 = arith.constant 1 : i32
    %c16_i32_7 = arith.constant 16 : i32
    %c0_i32_8 = arith.constant 0 : i32
    %9 = tpu.memref_slice %arg3[%c16_i32_7, %c0_i32_8] : memref<40x128xf32, #tpu.memory_space<any>> -> memref<24x128xf32, #tpu.memory_space<any>>
    %10 = tpu.memref_slice %arg4[%c1_i32_6] : memref<2x!tpu.dma_semaphore, #tpu.memory_space<semaphore_mem>> -> memref<1x!tpu.dma_semaphore, #tpu.memory_space<semaphore_mem>>
    %11 = tpu.memref_squeeze %10 : memref<1x!tpu.dma_semaphore, #tpu.memory_space<semaphore_mem>> -> memref<!tpu.dma_semaphore, #tpu.memory_space<semaphore_mem>>
    tpu.wait_dma2 semaphore(%11 : memref<!tpu.dma_semaphore, #tpu.memory_space<semaphore_mem>>) src(%arg2 : memref<24x128xf32, #tpu.memory_space<any>>) dst(%9 : memref<24x128xf32, #tpu.memory_space<any>>)
    return
  }
}

</mosaic_0001>

<bundles_post_ra>
// kernel: tpu_custom_call.1
= control target key start
LH: loop header
LB: loop body
LE: loop exit
PB: predicated region body
PF: predicated region fallthrough
CT: control target
= control target key end

     0   :  { %s65_s12 = smov [#allocation2]   ;;  %s66_s13 = smov [#allocation3]   ;;  %s97_s0 = inlined_call_operand.hbm [shape: f32[16,128], index: 0, kind: input, shape index: {}]   ;;  %s98_s2 = inlined_call_operand.hbm [shape: f32[40,128], index: 2, kind: output, shape index: {}]   ;;  %s99_s1 = inlined_call_operand.hbm [shape: f32[24,128], index: 1, kind: input, shape index: {}]  }
   0x1   :  { %s20_s11 = scalar_lea.hbm %s98_s2, 256  ;;  %s67_s14 = smov 0  }
   0x2   :  { %19 = dma.general %s97_s0, 256, %s98_s2, %s65_s12, %s66_s13, [#allocation4], %s67_s14, 0  }
   0x3   :  { %s68_s19 = smov [#allocation2 + $0x1]   ;;  %s69_s20 = smov [#allocation5]  }
   0x4   :  { %34 = dma.general %s99_s1, 384, %s20_s11, %s68_s19, %s69_s20, [#allocation6], %s67_s14, 0  }
   0x5   :  { %61 = dma.done.wait [#allocation2], 256 }
   0x6   :  { %62 = vsyncadd [#allocation2], 4294967040 }
   0x7   :  { %63 = dma.done.wait [#allocation2 + $0x1], 384 }
   0x8   :  { %64 = vsyncadd [#allocation2 + $0x1], 4294966912 }
   0x9   :  { %41 = vsyncmov [#allocation2] }
   0xc   :  { %s42_s23 = vpop.sfrf %41 }
   0xd   :  { %p54_p0 = scmp.ne.s32.totalorder %s42_s23, 0 }
   0xf   :  { %46 = shalt.err (%p54_p0)  }
  0x10   :  { %48 = vsyncmov [#allocation2 + $0x1] }
  0x13   :  { %s49_s24 = vpop.sfrf %48 }
  0x14   :  { %p55_p1 = scmp.ne.s32.totalorder %s49_s24, 0 }
  0x16   :  { %53 = shalt.err (%p55_p1)  }

</bundles_post_ra>
